<compile_context>
chip_gen: v7x
topology: tpu7x:2x2x1
jax: 0.10.0
libtpu: 0.0.40
codegen_flags: <defaults>
</compile_context>

<pallas_src>
import functools

import jax
import jax.numpy as jnp
from jax.experimental import pallas as pl
from jax.experimental.pallas import tpu as pltpu


def _accuracy_kernel(pred_ref, target_ref, out_ref, *, batch_size, col_chunk):
    i = pl.program_id(0)
    tb, num_classes = pred_ref.shape          # static block shape

    tgt = target_ref[...]                     # (tb, 1) int32

    # --- first-occurrence argmax over classes, chunked over columns ---------
    def chunk_argmax(c0, cw):
        blk = pred_ref[:, c0:c0 + cw]                          # (tb, cw), native dtype
        col = jax.lax.broadcasted_iota(jnp.int32, (tb, cw), 1) + jnp.int32(c0)
        cmax = jnp.max(blk, axis=1, keepdims=True)             # (tb, 1)
        cidx = jnp.min(jnp.where(blk == cmax, col, jnp.int32(num_classes)),
                       axis=1, keepdims=True)                  # (tb, 1) int32
        return cmax, cidx

    cw0 = min(col_chunk, num_classes)
    best_val, best_idx = chunk_argmax(0, cw0)
    c0 = cw0
    while c0 < num_classes:
        cw = min(col_chunk, num_classes - c0)
        cmax, cidx = chunk_argmax(c0, cw)
        take = cmax > best_val                 # strict >: earlier chunk wins ties
        best_idx = jnp.where(take, cidx, best_idx)
        best_val = jnp.where(take, cmax, best_val)
        c0 += cw

    # --- mask rows past the true batch (last tile may be ragged / garbage) --
    row = jax.lax.broadcasted_iota(jnp.int32, (tb, 1), 0) + i * jnp.int32(tb)
    match = (best_idx == tgt) & (row < jnp.int32(batch_size))

    cnt = jnp.sum(match.astype(jnp.int32))
    out_ref[...] = jnp.broadcast_to(cnt, (1, 128))             # per-tile partial count


def accuracy(pred, target, *, pred_tile_bytes=2 * 1024 * 1024, col_chunk=1024):
    """pred: (B, C) logits (f32/bf16/f16); target: (B,) int labels -> scalar f32."""
    B, C = pred.shape
    if pred.dtype.name not in ("float32", "bfloat16", "float16"):
        pred = pred.astype(jnp.float32)        # ints / f64: fall back to f32
    target = jnp.asarray(target).astype(jnp.int32).reshape(B, 1)

    itemsize = pred.dtype.itemsize
    align = 8 * (4 // itemsize)                # f32 -> 8 sublanes, bf16/f16 -> 16

    # --- byte-budgeted row tile (HBM-bound: big tiles amortize step overhead)
    bytes_per_row = max(C * itemsize, 1)
    max_rows = max(align, (pred_tile_bytes // bytes_per_row) // align * align)
    if B >= align:
        tb = int(min(max_rows, (B // align) * align))
    else:
        tb = int(B)                            # single full-extent block, tiny batch
    num_tiles = pl.cdiv(B, tb)

    kernel = functools.partial(_accuracy_kernel, batch_size=B,
                               col_chunk=int(col_chunk))

    counts = pl.pallas_call(
        kernel,
        out_shape=jax.ShapeDtypeStruct((num_tiles, 128), jnp.int32),
        grid_spec=pltpu.PrefetchScalarGridSpec(
            num_scalar_prefetch=0,
            grid=(num_tiles,),
            in_specs=[
                pl.BlockSpec((tb, C), lambda i: (i, 0)),
                pl.BlockSpec((tb, 1), lambda i: (i, 0)),
            ],
            # One lane-dense partial-count row per tile -> batch axis can shard
            # across v7x's two TensorCores; sum happens outside in plain JAX.
            out_specs=pl.BlockSpec((1, 128), lambda i: (i, 0)),
        ),
        compiler_params=pltpu.CompilerParams(
            dimension_semantics=("parallel",),
            vmem_limit_bytes=32 * 1024 * 1024,
        ),
    )(pred, target)

    correct = jnp.sum(counts[:, 0])
    return correct.astype(jnp.float32) / jnp.float32(B)


if __name__ == "__main__":
    key = jax.random.PRNGKey(0)
    k1, k2, k3, k4, k5, k6 = jax.random.split(key, 6)

    # Case 1: small classification batch, float32, single tile.
    B, C = 8, 32
    pred = jax.random.normal(k1, (B, C), dtype=jnp.float32)
    target = jax.random.randint(k2, (B,), 0, C, dtype=jnp.int32)
    acc = accuracy(pred, target)
    jax.block_until_ready(acc)
    ref = jnp.mean((jnp.argmax(pred, axis=1) == target).astype(jnp.float32))
    assert jnp.allclose(acc, ref), (acc, ref)

    # Case 2: ragged batch + forced multi-tile grid (exercises tail masking
    # with a partial last block, no pred padding).
    B2, C2 = 37, 160
    pred2 = jax.random.normal(k3, (B2, C2), dtype=jnp.float32)
    target2 = jax.random.randint(k4, (B2,), 0, C2, dtype=jnp.int32)
    acc2 = accuracy(pred2, target2, pred_tile_bytes=8 * C2 * 4)   # tb=8, 5 tiles
    jax.block_until_ready(acc2)
    ref2 = jnp.mean((jnp.argmax(pred2, axis=1) == target2).astype(jnp.float32))
    assert jnp.allclose(acc2, ref2), (acc2, ref2)

    # Case 3: bf16 logits (no up-cast), ragged batch, column chunking exercised.
    B3, C3 = 19, 24
    pred3 = jax.random.normal(k5, (B3, C3), dtype=jnp.bfloat16)
    target3 = jax.random.randint(k6, (B3,), 0, C3, dtype=jnp.int32)
    acc3 = accuracy(pred3, target3, col_chunk=8)                  # 3 column chunks
    jax.block_until_ready(acc3)
    ref3 = jnp.mean((jnp.argmax(pred3, axis=1) == target3).astype(jnp.float32))
    assert jnp.allclose(acc3, ref3), (acc3, ref3)

    print("KERNEL_OK")
</pallas_src>

<mosaic_0001>
module attributes {stable_mosaic.version = 11 : i64} {
  func.func @_accuracy_kernel(%arg0: i32, %arg1: memref<8x32xf32, #tpu.memory_space<vmem>>, %arg2: memref<8x1xi32, #tpu.memory_space<vmem>>, %arg3: memref<1x128xi32, #tpu.memory_space<vmem>>) attributes {dimension_semantics = [#tpu.dimension_semantics<parallel>], iteration_bounds = array<i64: 1>, scalar_prefetch = 0 : i64, scratch_operands = 0 : i64, tpu.core_type = #tpu.core_type<tc>, window_params = [{transform_indices = @transform_0, window_bounds = array<i64: 8, 32>}, {transform_indices = @transform_1, window_bounds = array<i64: 8, 1>}, {transform_indices = @transform_2, window_bounds = array<i64: 1, 128>}]} {
    %c0 = arith.constant 0 : index
    %c0_0 = arith.constant 0 : index
    %0 = vector.load %arg2[%c0, %c0_0] : memref<8x1xi32, #tpu.memory_space<vmem>>, vector<8x1xi32>
    %c0_1 = arith.constant 0 : index
    %c0_2 = arith.constant 0 : index
    %1 = vector.load %arg1[%c0_1, %c0_2] : memref<8x32xf32, #tpu.memory_space<vmem>>, vector<8x32xf32>
    %2 = tpu.iota {dimensions = array<i32: 1>} : vector<8x32xi32>
    %c0_i32 = arith.constant 0 : i32
    %3 = vector.broadcast %c0_i32 : i32 to vector<8x32xi32>
    %4 = arith.addi %2, %3 : vector<8x32xi32>
    %cst = arith.constant dense<0xFF800000> : vector<8xf32>
    %5 = vector.multi_reduction <maximumf>, %1, %cst [1] : vector<8x32xf32> to vector<8xf32>
    %6 = vector.shape_cast %5 : vector<8xf32> to vector<8x1xf32>
    %7 = vector.broadcast %6 : vector<8x1xf32> to vector<8x32xf32>
    %8 = arith.cmpf oeq, %1, %7 : vector<8x32xf32>
    %c32_i32 = arith.constant 32 : i32
    %9 = vector.broadcast %c32_i32 : i32 to vector<8x32xi32>
    %10 = arith.select %8, %4, %9 : vector<8x32xi1>, vector<8x32xi32>
    %cst_3 = arith.constant dense<2147483647> : vector<8xi32>
    %11 = vector.multi_reduction <minsi>, %10, %cst_3 [1] : vector<8x32xi32> to vector<8xi32>
    %12 = vector.shape_cast %11 : vector<8xi32> to vector<8x1xi32>
    %13 = tpu.iota {dimensions = array<i32: 0>} : vector<8x1xi32>
    %c8_i32 = arith.constant 8 : i32
    %14 = arith.muli %arg0, %c8_i32 : i32
    %15 = vector.broadcast %14 : i32 to vector<8x1xi32>
    %16 = arith.addi %13, %15 : vector<8x1xi32>
    %17 = arith.cmpi eq, %12, %0 : vector<8x1xi32>
    %c8_i32_4 = arith.constant 8 : i32
    %18 = vector.broadcast %c8_i32_4 : i32 to vector<8x1xi32>
    %19 = arith.cmpi slt, %16, %18 : vector<8x1xi32>
    %20 = arith.andi %17, %19 : vector<8x1xi1>
    %21 = arith.extui %20 : vector<8x1xi1> to vector<8x1xi32>
    %22 = vector.shape_cast %21 : vector<8x1xi32> to vector<1x8x1xi32>
    %cst_5 = arith.constant dense<0> : vector<1xi32>
    %23 = vector.multi_reduction <add>, %22, %cst_5 [1, 2] : vector<1x8x1xi32> to vector<1xi32>
    %24 = vector.shape_cast %23 : vector<1xi32> to vector<1x1x1xi32>
    %25 = vector.extract %24[0, 0, 0] : i32 from vector<1x1x1xi32>
    %26 = vector.broadcast %25 : i32 to vector<1x128xi32>
    %c0_6 = arith.constant 0 : index
    %c0_7 = arith.constant 0 : index
    %27 = vector.load %arg3[%c0_6, %c0_7] : memref<1x128xi32, #tpu.memory_space<vmem>>, vector<1x128xi32>
    tpu.vector_store %arg3[%c0_6, %c0_7], %26 {strides = array<i32>} : memref<1x128xi32, #tpu.memory_space<vmem>>, vector<1x128xi32>,
    return
  }
  func.func @transform_0(%arg0: i32) -> (i32, i32) {
    %c0_i32 = arith.constant 0 : i32
    %c0_i32_0 = arith.constant 0 : i32
    return %arg0, %c0_i32 : i32, i32
  }
  func.func @transform_1(%arg0: i32) -> (i32, i32) {
    %c0_i32 = arith.constant 0 : i32
    %c0_i32_0 = arith.constant 0 : i32
    return %arg0, %c0_i32 : i32, i32
  }
  func.func @transform_2(%arg0: i32) -> (i32, i32) {
    %c0_i32 = arith.constant 0 : i32
    %c0_i32_0 = arith.constant 0 : i32
    return %arg0, %c0_i32 : i32, i32
  }
}

</mosaic_0001>

<bundles_post_ra>
// kernel: tpu_custom_call.1
= control target key start
LH: loop header
LB: loop body
LE: loop exit
PB: predicated region body
PF: predicated region fallthrough
CT: control target
= control target key end

     0   :  { %vm16_vm0 = vcmask 261120   ;;  %s146_s0 = inlined_call_operand.vmem [shape: f32[8,32], index: 0, kind: input, shape index: {}]   ;;  %s147_s1 = inlined_call_operand.vmem [shape: s32[8,1], index: 1, kind: input, shape index: {}]   ;;  %s148_s2 = inlined_call_operand.hbm [shape: s32[1,128], index: 2, kind: output, shape index: {}]  }
   0x1   :  { %v13_v0 = vld [vmem:[%s146_s0] sm:$0xff] }
   0x2   :  { %7 = vsyncpa [#allocation3], 0  ;;  %v17_v1 = vsel %vm16_vm0, %v13_v0, -inf  ;;  %v14_v2 = vlaneseq  ;;  %v12_v17 = vld [vmem:[%s147_s1] sm:$0xff]  ;;  %vm46_vm3 = vcmask 7168   ;;  %v111_v19 = vmov 0  }
   0x3   :  { %18 = vmax.xlane.f32.xlu0 %v17_v1  ;;  %s112_s1 = smov [#allocation2]  }
   0x4   :  { %v15_v3 = vand.u32 127, %v14_v2  ;;  %s75_s12 = sshll.u32 %s112_s1, 4  ;;  %s76_s12 = int_to_ptr.vmem [resolvable:$true] %s75_s12 }
   0x5   :  { %s87_s14 = scalar_lea.vmem %s76_s12, 16  ;;  %s91_s15 = scalar_lea.vmem %s76_s12, 32 }
   0x6   :  { %p88_p0 = scmp.ne.s32.totalorder %s76_s12, %s87_s14  ;;  %p92_p1 = scmp.lt.s32.totalorder %s76_s12, %s76_s12 }
   0x7   :  { %p93_p2 = scmp.lt.s32.totalorder %s91_s15, %s87_s14 }
   0x9   :  { %p94_p3 = por %p93_p2, %p92_p1 }
   0xb   :  { %p95_p4 = pnand %p94_p3, %p88_p0 }
  0x90   :  { %v19_v4 = vpop.xlane.xlu0 %18 }
  0x91   :  { %vm20_vm1 = vcmp.eq.f32.partialorder %v13_v0, %v19_v4 }
  0x92   :  { %v21_v5 = vsel %vm20_vm1, %v15_v3, 32 }
  0x93   :  { %v22_v6 = vsel %vm16_vm0, %v21_v5, 2147483647 }
  0x94   :  { %v24_v7 = vshra.s32 %v22_v6, 16  ;;  %v23_v9 = vand.u32 65535, %v22_v6 }
  0x96   :  { %v26_v8 = vcvt.s32.f32 %v24_v7  ;;  %v25_v11 = vcvt.s32.f32 %v23_v9 }
  0x98   :  { %27 = vmin.xlane.f32.xlu0 %v26_v8 }
 0x125   :  { %v28_v10 = vpop.xlane.xlu0 %27 }
 0x126   :  { %vm29_vm2 = vcmp.eq.f32.partialorder %v26_v8, %v28_v10  ;;  %v34_v13 = vcvt.f32.s32 %v28_v10 }
 0x127   :  { %v30_v12 = vsel %vm29_vm2, %v25_v11, inf }
 0x128   :  { %31 = vmin.xlane.f32.xlu1 %v30_v12  ;;  %v35_v15 = vshll.u32 %v34_v13, 16 }
 0x1b5   :  { %v32_v14 = vpop.xlane.xlu1 %31 }
 0x1b6   :  { %v33_v16 = vcvt.f32.s32 %v32_v14 }
 0x1b8   :  { %v36_v18 = vadd.s32 %v35_v15, %v33_v16 }
 0x1ba   :  { %vm42_vm4 = vcmp.eq.s32.totalorder %v36_v18, %v12_v17 }
 0x1bb   :  { %v45_v20 = vsel %vm42_vm4, 1, %v111_v19 }
 0x1bc   :  { %v47_v21 = vsel %vm46_vm3, %v45_v20, 0 }
 0x1bd   :  { %v49_v22 = vshrl.u32 %v47_v21, 16  ;;  %v48_v23 = vand.u32 65535, %v47_v21 }
 0x1bf   :  { %v51_v24 = vcvt.s32.f32 %v49_v22  ;;  %v50_v25 = vcvt.s32.f32 %v48_v23 }
 0x1c1   :  { %54 = vadd.xlane.f32.xlu1 %v51_v24  ;;  %52 = vadd.xlane.f32.xlu0 %v50_v25 }
 0x24e   :  { %v55_v26 = vpop.xlane.xlu1 %54  ;;  %v53_v27 = vpop.xlane.xlu0 %52 }
 0x24f   :  { %v57_v28 = vcvt.f32.s32 %v55_v26  ;;  %v56_v30 = vcvt.f32.s32 %v53_v27 }
 0x251   :  { %v58_v29 = vshll.u32 %v57_v28, 16 }
 0x253   :  { %v59_v31 = vadd.s32 %v58_v29, %v56_v30 }
 0x255   :  { %v60_v32 = vrot.slane %v59_v31, 4 }
 0x257   :  { %v61_v33 = vadd.s32 %v60_v32, %v59_v31 }
 0x259   :  { %v62_v34 = vrot.slane %v61_v33, 2 }
 0x25b   :  { %v63_v35 = vadd.s32 %v62_v34, %v61_v33 }
 0x25d   :  { %v64_v36 = vrot.slane %v63_v35, 1 }
 0x25f   :  { %v65_v37 = vadd.s32 %v64_v36, %v63_v35 }
 0x261   :  { %83 = vpush %v65_v37 }
 0x292   :  { %s84_s13 = spop %83 }
 0x293   :  { %v67_v38 = vstv %s84_s13 }
 0x294   :  { %68 = vst [vmem:[#allocation2] sm:$0x1] %v67_v38 }
 0x295   :  { %98 = shalt.err (!%p95_p4)
}
 0x296   :  { %s99_s18 = scalar_lea.hbm %s148_s2, 16 }
 0x297   :  { %p100_p5 = scmp.ne.s32.totalorder %s148_s2, %s99_s18  ;;  %p103_p6 = scmp.lt.u32.totalorder %s99_s18, %s148_s2 }
 0x299   :  { %p105_p7 = pnand %p103_p6, %p100_p5 }
 0x29b   :  { %108 = shalt.err (!%p105_p7)
}
 0x29c   :  { %78 = dma.vmem_to_hbm [thread:$0]  %s76_s12, 16, %s148_s2, [#allocation3]  }
 0x29d   :  { %109 = dma.done.wait [#allocation3], 16  }
 0x29e   :  { %110 = vsyncadd [#allocation3], 4294967280 }
 0x29f   :  { %82 = vsyncpa [#allocation3], 1 }

</bundles_post_ra>
